<compile_context>
chip_gen: v7x
topology: tpu7x:2x2x1
jax: 0.10.0
libtpu: 0.0.40
codegen_flags: <defaults>
</compile_context>

<pallas_src>
import jax
import jax.numpy as jnp
from jax.experimental import pallas as pl
from jax.experimental.pallas import tpu as pltpu


def _combined_kernel(x_ref, a_ref, side_ref, y_ref,
                     wfp1_ref, bfp1_ref, wfp2_ref, bfp2_ref,
                     w1_ref, b1_ref, w2_ref, b2_ref,
                     wfc_g_ref, wfc_h_ref, pool_ref,
                     sqerr_ref):
    f32 = jnp.float32
    bf16 = jnp.bfloat16
    hl_dim, hidden = w1_ref.shape

    # ---- GNN: two (Linear -> ReLU -> (I+A) message passing) layers on the flattened
    # [TILE_B*ATOMS, D] node matrix; A_hat is block-diagonal so molecules never mix.
    # TODO(synk): the reference GNN embeds integer fingerprints via nn.Embedding and may
    # L2-normalize between layers; here we start from already-embedded node features.
    h = x_ref[...]                                    # [N, D]   bf16
    a_hat = a_ref[0]                                  # [N, N]   bf16, block-diag (I + A)
    hv = jnp.maximum(
        jnp.dot(h, wfp1_ref[...], preferred_element_type=f32) + bfp1_ref[...], 0.0)
    h = jnp.dot(a_hat, hv.astype(bf16), preferred_element_type=f32)       # hv + A@hv
    hv = jnp.maximum(
        jnp.dot(h.astype(bf16), wfp2_ref[...], preferred_element_type=f32)
        + bfp2_ref[...], 0.0)
    h = jnp.dot(a_hat, hv.astype(bf16), preferred_element_type=f32)       # [N, D] f32

    # Mean pool per molecule via a [TILE_B, N] pooling matmul (rows are 1/ATOMS over the
    # molecule's atoms). TODO(synk): needs per-molecule atom counts if atoms are padded.
    mol = jnp.dot(pool_ref[...], h, preferred_element_type=f32)           # [TILE_B, D]

    # ---- mlp_hl: Linear -> ReLU -> Dropout(keep mask) -> Linear -> ReLU -------------
    side = side_ref[...]                              # [TILE_B, HL+HID] f32
    hl = side[:, :hl_dim]
    keep = side[:, hl_dim:hl_dim + hidden]            # pre-scaled inverted-dropout mask
    h1 = jnp.maximum(
        jnp.dot(hl, w1_ref[...], preferred_element_type=f32) + b1_ref[...], 0.0) * keep
    h2 = jnp.maximum(
        jnp.dot(h1, w2_ref[...], preferred_element_type=f32) + b2_ref[...], 0.0)

    # ---- fc over concat([mol, h2]) with out_features=1, computed directly in the
    # lane-dense orientation: w @ feats^T gives a [1, TILE_B] row.
    pred = (pl.dot(wfc_g_ref[...], mol, trans_b=True)
            + pl.dot(wfc_h_ref[...], h2, trans_b=True))                   # [1, TILE_B]
    diff = pred - y_ref[0]                            # y already has the fc bias folded in
    sqerr_ref[0] = diff * diff                        # lane-dense per-molecule sq. error


def _pick_tile_b(batch, atoms, target_nodes=128):
    """Largest TILE_B dividing the batch with TILE_B*ATOMS <= target_nodes, so one grid
    step fills ~128 sublanes of an MXU pass; grid steps = batch // TILE_B."""
    t = max(1, min(batch, max(1, target_nodes // atoms)))
    while batch % t != 0:
        t -= 1
    return t


def combined_model_loss(dropout_key, x, adj_blocks, hl, y, params, dropout_rate,
                        train=True):
    """x: [B, ATOMS, D] embedded node features, adj_blocks: [B, ATOMS, ATOMS] 0/1
    adjacency without self loops, hl: [B, HL_DIM], y: [B, 1]. Returns scalar MSE loss."""
    (wfp1, bfp1, wfp2, bfp2, w1, b1, w2, b2, wfc_g, wfc_h, bfc) = params
    B, atoms, d_gnn = x.shape
    hl_dim = hl.shape[-1]
    hidden = w1.shape[-1]
    out_dim = w2.shape[-1]
    f32, bf16 = jnp.float32, jnp.bfloat16

    tile_b = _pick_tile_b(B, atoms)
    num_tiles = B // tile_b
    n_nodes = tile_b * atoms

    # --- per-tile block-diagonal (I + A): folds the residual into the adjacency and
    # turns message passing into one [n_nodes, n_nodes] MXU matmul per layer.
    a_hat = adj_blocks + jnp.eye(atoms, dtype=adj_blocks.dtype)[None]     # [B, A, A]
    a_hat = a_hat.reshape(num_tiles, tile_b, atoms, atoms)
    eye_tb = jnp.eye(tile_b, dtype=a_hat.dtype)
    a_hat_bd = jnp.einsum('bc,tbij->tbicj', eye_tb, a_hat)
    a_hat_bd = a_hat_bd.reshape(num_tiles, n_nodes, n_nodes).astype(bf16)

    # --- flattened node features (feature-last, bf16; exact 0/1 adjacency stays exact).
    x_flat = x.reshape(B * atoms, d_gnn).astype(bf16)

    # --- mean-pool matrix: row b is 1/ATOMS over molecule b's atoms within the tile.
    pool = jnp.repeat(jnp.eye(tile_b, dtype=f32), atoms, axis=1) / float(atoms)

    # --- dropout keep mask (inverted dropout), host-side PRNG (portable, no in-kernel PRNG).
    # TODO(synk): pass a fresh dropout_key every training step.
    p = float(dropout_rate)
    if train and p > 0.0:
        keep = jax.random.bernoulli(dropout_key, 1.0 - p, (B, hidden))
        keep = keep.astype(f32) * (1.0 / (1.0 - p))
    else:
        keep = jnp.ones((B, hidden), f32)

    # Per-molecule side rows: [hl | keep-mask] -> one DMA per tile instead of several.
    side = jnp.concatenate([hl.astype(f32), keep], axis=-1)               # [B, HL+HID]
    side_dim = hl_dim + hidden

    # Targets, lane-dense per tile; fc bias folded in: pred + bfc - y == pred - (y - bfc).
    y_ld = y.reshape(num_tiles, 1, tile_b).astype(f32) - bfc[0, 0]

    sqerr = pl.pallas_call(
        _combined_kernel,
        grid=(num_tiles,),
        in_specs=[
            pl.BlockSpec((n_nodes, d_gnn), lambda t: (t, 0)),          # node features
            pl.BlockSpec((1, n_nodes, n_nodes), lambda t: (t, 0, 0)),  # block-diag I + A
            pl.BlockSpec((tile_b, side_dim), lambda t: (t, 0)),        # [hl | keep mask]
            pl.BlockSpec((1, 1, tile_b), lambda t: (t, 0, 0)),         # y - bfc (lane-dense)
            pl.BlockSpec((d_gnn, d_gnn), lambda t: (0, 0)),            # wfp1
            pl.BlockSpec((1, d_gnn), lambda t: (0, 0)),                # bfp1
            pl.BlockSpec((d_gnn, d_gnn), lambda t: (0, 0)),            # wfp2
            pl.BlockSpec((1, d_gnn), lambda t: (0, 0)),                # bfp2
            pl.BlockSpec((hl_dim, hidden), lambda t: (0, 0)),          # w1
            pl.BlockSpec((1, hidden), lambda t: (0, 0)),               # b1
            pl.BlockSpec((hidden, out_dim), lambda t: (0, 0)),         # w2
            pl.BlockSpec((1, out_dim), lambda t: (0, 0)),              # b2
            pl.BlockSpec((1, d_gnn), lambda t: (0, 0)),                # fc weight (mol part)
            pl.BlockSpec((1, out_dim), lambda t: (0, 0)),              # fc weight (hl part)
            pl.BlockSpec((tile_b, n_nodes), lambda t: (0, 0)),         # mean-pool matrix
        ],
        out_specs=pl.BlockSpec((1, 1, tile_b), lambda t: (t, 0, 0)),
        out_shape=jax.ShapeDtypeStruct((num_tiles, 1, tile_b), f32),
        compiler_params=pltpu.CompilerParams(
            dimension_semantics=("parallel",)),    # 2 even grid steps -> both v7x TCs busy
    )(x_flat, a_hat_bd, side, y_ld,
      wfp1.astype(bf16), bfp1, wfp2.astype(bf16), bfp2,
      w1, b1, w2, b2, wfc_g, wfc_h, pool)

    # F.mse_loss: mean of per-molecule squared errors; the only cross-tile reduction is
    # done outside the kernel so the grid axis stays 'parallel'.
    # TODO(synk): eval path (train=False returning (pred, correct) numpy arrays) not implemented.
    return jnp.mean(sqerr)


def _linear_params(key, fan_in, fan_out):
    """PyTorch-style uniform(-1/sqrt(fan_in), 1/sqrt(fan_in)); W stored (in, out)."""
    kw, kb = jax.random.split(key)
    lim = 1.0 / float(fan_in) ** 0.5
    w = jax.random.uniform(kw, (fan_in, fan_out), jnp.float32, -lim, lim)
    b = jax.random.uniform(kb, (1, fan_out), jnp.float32, -lim, lim)
    return w, b


if __name__ == "__main__":
    # Small shapes consistent with the module's forward.
    B = 32                 # molecules in the batch (2 grid steps of 16)
    ATOMS = 8              # atoms per molecule (uniform for the demo)
    D_GNN = 32             # gnn.W_property.in_features (molecular vector dim)
    HL_DIM = 8             # homo_lumo_dim
    MLP_HIDDEN = 32        # mlp_hidden_dim
    MLP_OUT = 16           # mlp_output_dim
    DROPOUT = 0.1

    root = jax.random.PRNGKey(0)
    keys = jax.random.split(root, 10)

    # --- deterministic synthetic inputs ---
    x = jax.random.normal(keys[0], (B, ATOMS, D_GNN), jnp.float32)   # embedded atom feats
    rand = jax.random.uniform(keys[1], (B, ATOMS, ATOMS))
    sym = (rand + jnp.swapaxes(rand, 1, 2)) * 0.5
    adj_blocks = (sym < 0.3).astype(jnp.float32) \
        * (1.0 - jnp.eye(ATOMS, dtype=jnp.float32)[None])            # per-molecule adj
    hl = jax.random.normal(keys[2], (B, HL_DIM), jnp.float32)        # homo_lumo_data
    y = jax.random.normal(keys[3], (B, 1), jnp.float32)              # correct_values.view(-1,1)

    # --- deterministic parameters (shapes from the module's __init__) ---
    wfp1, bfp1 = _linear_params(keys[4], D_GNN, D_GNN)               # gnn W_fingerprint[0]
    wfp2, bfp2 = _linear_params(keys[5], D_GNN, D_GNN)               # gnn W_fingerprint[1]
    w1, b1 = _linear_params(keys[6], HL_DIM, MLP_HIDDEN)             # mlp_hl Linear 1
    w2, b2 = _linear_params(keys[7], MLP_HIDDEN, MLP_OUT)            # mlp_hl Linear 2
    wfc, bfc = _linear_params(keys[8], D_GNN + MLP_OUT, 1)           # fc
    wfc_g = wfc[:D_GNN].T                                            # [1, D_GNN]
    wfc_h = wfc[D_GNN:].T                                            # [1, MLP_OUT]

    params = (wfp1, bfp1, wfp2, bfp2, w1, b1, w2, b2, wfc_g, wfc_h, bfc)

    loss = combined_model_loss(keys[9], x, adj_blocks, hl, y, params, DROPOUT)
    jax.block_until_ready(loss)
    print("KERNEL_OK")
</pallas_src>

<mosaic_0001>
module attributes {stable_mosaic.version = 11 : i64} {
  func.func @_combined_kernel(%arg0: i32, %arg1: memref<128x32xbf16, #tpu.memory_space<vmem>>, %arg2: memref<1x128x128xbf16, #tpu.memory_space<vmem>>, %arg3: memref<16x40xf32, #tpu.memory_space<vmem>>, %arg4: memref<1x1x16xf32, #tpu.memory_space<vmem>>, %arg5: memref<32x32xbf16, #tpu.memory_space<vmem>>, %arg6: memref<1x32xf32, #tpu.memory_space<vmem>>, %arg7: memref<32x32xbf16, #tpu.memory_space<vmem>>, %arg8: memref<1x32xf32, #tpu.memory_space<vmem>>, %arg9: memref<8x32xf32, #tpu.memory_space<vmem>>, %arg10: memref<1x32xf32, #tpu.memory_space<vmem>>, %arg11: memref<32x16xf32, #tpu.memory_space<vmem>>, %arg12: memref<1x16xf32, #tpu.memory_space<vmem>>, %arg13: memref<1x32xf32, #tpu.memory_space<vmem>>, %arg14: memref<1x16xf32, #tpu.memory_space<vmem>>, %arg15: memref<16x128xf32, #tpu.memory_space<vmem>>, %arg16: memref<1x1x16xf32, #tpu.memory_space<vmem>>) attributes {dimension_semantics = [#tpu.dimension_semantics<parallel>], iteration_bounds = array<i64: 2>, scalar_prefetch = 0 : i64, scratch_operands = 0 : i64, tpu.core_type = #tpu.core_type<tc>, window_params = [{transform_indices = @transform_0, window_bounds = array<i64: 128, 32>}, {transform_indices = @transform_1, window_bounds = array<i64: 1, 128, 128>}, {transform_indices = @transform_2, window_bounds = array<i64: 16, 40>}, {transform_indices = @transform_3, window_bounds = array<i64: 1, 1, 16>}, {pipeline_mode = #tpu.pipeline_mode<synchronous>, transform_indices = @transform_4, window_bounds = array<i64: 32, 32>}, {pipeline_mode = #tpu.pipeline_mode<synchronous>, transform_indices = @transform_5, window_bounds = array<i64: 1, 32>}, {pipeline_mode = #tpu.pipeline_mode<synchronous>, transform_indices = @transform_6, window_bounds = array<i64: 32, 32>}, {pipeline_mode = #tpu.pipeline_mode<synchronous>, transform_indices = @transform_7, window_bounds = array<i64: 1, 32>}, {pipeline_mode = #tpu.pipeline_mode<synchronous>, transform_indices = @transform_8, window_bounds = array<i64: 8, 32>}, {pipeline_mode = #tpu.pipeline_mode<synchronous>, transform_indices = @transform_9, window_bounds = array<i64: 1, 32>}, {pipeline_mode = #tpu.pipeline_mode<synchronous>, transform_indices = @transform_10, window_bounds = array<i64: 32, 16>}, {pipeline_mode = #tpu.pipeline_mode<synchronous>, transform_indices = @transform_11, window_bounds = array<i64: 1, 16>}, {pipeline_mode = #tpu.pipeline_mode<synchronous>, transform_indices = @transform_12, window_bounds = array<i64: 1, 32>}, {pipeline_mode = #tpu.pipeline_mode<synchronous>, transform_indices = @transform_13, window_bounds = array<i64: 1, 16>}, {pipeline_mode = #tpu.pipeline_mode<synchronous>, transform_indices = @transform_14, window_bounds = array<i64: 16, 128>}, {transform_indices = @transform_15, window_bounds = array<i64: 1, 1, 16>}]} {
    %c0 = arith.constant 0 : index
    %c0_0 = arith.constant 0 : index
    %0 = vector.load %arg1[%c0, %c0_0] : memref<128x32xbf16, #tpu.memory_space<vmem>>, vector<128x32xbf16>
    %c0_1 = arith.constant 0 : index
    %c0_2 = arith.constant 0 : index
    %c0_3 = arith.constant 0 : index
    %1 = vector.load %arg2[%c0_1, %c0_2, %c0_3] : memref<1x128x128xbf16, #tpu.memory_space<vmem>>, vector<1x128x128xbf16>
    %2 = vector.shape_cast %1 : vector<1x128x128xbf16> to vector<128x128xbf16>
    %c0_4 = arith.constant 0 : index
    %c0_5 = arith.constant 0 : index
    %3 = vector.load %arg5[%c0_4, %c0_5] : memref<32x32xbf16, #tpu.memory_space<vmem>>, vector<32x32xbf16>
    %cst = arith.constant dense<0.000000e+00> : vector<128x32xf32>
    %4 = tpu.matmul %0, %3, %cst {dimension_numbers = #tpu.dot_dimension_numbers<[1], [0], [0], [1], [0, 0, 1, 1], [], []>} : vector<128x32xbf16>, vector<32x32xbf16>, vector<128x32xf32> -> vector<128x32xf32>
    %c0_6 = arith.constant 0 : index
    %c0_7 = arith.constant 0 : index
    %5 = vector.load %arg6[%c0_6, %c0_7] : memref<1x32xf32, #tpu.memory_space<vmem>>, vector<1x32xf32>
    %6 = vector.broadcast %5 : vector<1x32xf32> to vector<128x32xf32>
    %7 = arith.addf %4, %6 : vector<128x32xf32>
    %cst_8 = arith.constant 0.000000e+00 : f32
    %8 = vector.broadcast %cst_8 : f32 to vector<128x32xf32>
    %9 = arith.maximumf %7, %8 : vector<128x32xf32>
    %10 = arith.truncf %9 : vector<128x32xf32> to vector<128x32xbf16>
    %cst_9 = arith.constant dense<0.000000e+00> : vector<128x32xf32>
    %11 = tpu.matmul %2, %10, %cst_9 {dimension_numbers = #tpu.dot_dimension_numbers<[1], [0], [0], [1], [0, 0, 1, 1], [], []>} : vector<128x128xbf16>, vector<128x32xbf16>, vector<128x32xf32> -> vector<128x32xf32>
    %12 = arith.truncf %11 : vector<128x32xf32> to vector<128x32xbf16>
    %c0_10 = arith.constant 0 : index
    %c0_11 = arith.constant 0 : index
    %13 = vector.load %arg7[%c0_10, %c0_11] : memref<32x32xbf16, #tpu.memory_space<vmem>>, vector<32x32xbf16>
    %cst_12 = arith.constant dense<0.000000e+00> : vector<128x32xf32>
    %14 = tpu.matmul %12, %13, %cst_12 {dimension_numbers = #tpu.dot_dimension_numbers<[1], [0], [0], [1], [0, 0, 1, 1], [], []>} : vector<128x32xbf16>, vector<32x32xbf16>, vector<128x32xf32> -> vector<128x32xf32>
    %c0_13 = arith.constant 0 : index
    %c0_14 = arith.constant 0 : index
    %15 = vector.load %arg8[%c0_13, %c0_14] : memref<1x32xf32, #tpu.memory_space<vmem>>, vector<1x32xf32>
    %16 = vector.broadcast %15 : vector<1x32xf32> to vector<128x32xf32>
    %17 = arith.addf %14, %16 : vector<128x32xf32>
    %cst_15 = arith.constant 0.000000e+00 : f32
    %18 = vector.broadcast %cst_15 : f32 to vector<128x32xf32>
    %19 = arith.maximumf %17, %18 : vector<128x32xf32>
    %20 = arith.truncf %19 : vector<128x32xf32> to vector<128x32xbf16>
    %cst_16 = arith.constant dense<0.000000e+00> : vector<128x32xf32>
    %21 = tpu.matmul %2, %20, %cst_16 {dimension_numbers = #tpu.dot_dimension_numbers<[1], [0], [0], [1], [0, 0, 1, 1], [], []>} : vector<128x128xbf16>, vector<128x32xbf16>, vector<128x32xf32> -> vector<128x32xf32>
    %c0_17 = arith.constant 0 : index
    %c0_18 = arith.constant 0 : index
    %22 = vector.load %arg15[%c0_17, %c0_18] : memref<16x128xf32, #tpu.memory_space<vmem>>, vector<16x128xf32>
    %cst_19 = arith.constant dense<0.000000e+00> : vector<16x32xf32>
    %23 = tpu.matmul %22, %21, %cst_19 {dimension_numbers = #tpu.dot_dimension_numbers<[1], [0], [0], [1], [0, 0, 1, 1], [], []>} : vector<16x128xf32>, vector<128x32xf32>, vector<16x32xf32> -> vector<16x32xf32>
    %c0_20 = arith.constant 0 : index
    %c0_21 = arith.constant 0 : index
    %24 = vector.load %arg3[%c0_20, %c0_21] : memref<16x40xf32, #tpu.memory_space<vmem>>, vector<16x40xf32>
    %25 = vector.extract_strided_slice %24 {offsets = [0, 0], sizes = [16, 8], strides = [1, 1]} : vector<16x40xf32> to vector<16x8xf32>
    %26 = vector.extract_strided_slice %24 {offsets = [0, 8], sizes = [16, 32], strides = [1, 1]} : vector<16x40xf32> to vector<16x32xf32>
    %c0_22 = arith.constant 0 : index
    %c0_23 = arith.constant 0 : index
    %27 = vector.load %arg9[%c0_22, %c0_23] : memref<8x32xf32, #tpu.memory_space<vmem>>, vector<8x32xf32>
    %cst_24 = arith.constant dense<0.000000e+00> : vector<16x32xf32>
    %28 = tpu.matmul %25, %27, %cst_24 {dimension_numbers = #tpu.dot_dimension_numbers<[1], [0], [0], [1], [0, 0, 1, 1], [], []>} : vector<16x8xf32>, vector<8x32xf32>, vector<16x32xf32> -> vector<16x32xf32>
    %c0_25 = arith.constant 0 : index
    %c0_26 = arith.constant 0 : index
    %29 = vector.load %arg10[%c0_25, %c0_26] : memref<1x32xf32, #tpu.memory_space<vmem>>, vector<1x32xf32>
    %30 = vector.broadcast %29 : vector<1x32xf32> to vector<16x32xf32>
    %31 = arith.addf %28, %30 : vector<16x32xf32>
    %cst_27 = arith.constant 0.000000e+00 : f32
    %32 = vector.broadcast %cst_27 : f32 to vector<16x32xf32>
    %33 = arith.maximumf %31, %32 : vector<16x32xf32>
    %34 = arith.mulf %33, %26 : vector<16x32xf32>
    %c0_28 = arith.constant 0 : index
    %c0_29 = arith.constant 0 : index
    %35 = vector.load %arg11[%c0_28, %c0_29] : memref<32x16xf32, #tpu.memory_space<vmem>>, vector<32x16xf32>
    %cst_30 = arith.constant dense<0.000000e+00> : vector<16x16xf32>
    %36 = tpu.matmul %34, %35, %cst_30 {dimension_numbers = #tpu.dot_dimension_numbers<[1], [0], [0], [1], [0, 0, 1, 1], [], []>} : vector<16x32xf32>, vector<32x16xf32>, vector<16x16xf32> -> vector<16x16xf32>
    %c0_31 = arith.constant 0 : index
    %c0_32 = arith.constant 0 : index
    %37 = vector.load %arg12[%c0_31, %c0_32] : memref<1x16xf32, #tpu.memory_space<vmem>>, vector<1x16xf32>
    %38 = vector.broadcast %37 : vector<1x16xf32> to vector<16x16xf32>
    %39 = arith.addf %36, %38 : vector<16x16xf32>
    %cst_33 = arith.constant 0.000000e+00 : f32
    %40 = vector.broadcast %cst_33 : f32 to vector<16x16xf32>
    %41 = arith.maximumf %39, %40 : vector<16x16xf32>
    %c0_34 = arith.constant 0 : index
    %c0_35 = arith.constant 0 : index
    %42 = vector.load %arg13[%c0_34, %c0_35] : memref<1x32xf32, #tpu.memory_space<vmem>>, vector<1x32xf32>
    %cst_36 = arith.constant dense<0.000000e+00> : vector<1x16xf32>
    %43 = tpu.matmul %42, %23, %cst_36 {dimension_numbers = #tpu.dot_dimension_numbers<[1], [1], [0], [0], [0, 0, 1, 0], [], []>} : vector<1x32xf32>, vector<16x32xf32>, vector<1x16xf32> -> vector<1x16xf32>
    %c0_37 = arith.constant 0 : index
    %c0_38 = arith.constant 0 : index
    %44 = vector.load %arg14[%c0_37, %c0_38] : memref<1x16xf32, #tpu.memory_space<vmem>>, vector<1x16xf32>
    %cst_39 = arith.constant dense<0.000000e+00> : vector<1x16xf32>
    %45 = tpu.matmul %44, %41, %cst_39 {dimension_numbers = #tpu.dot_dimension_numbers<[1], [1], [0], [0], [0, 0, 1, 0], [], []>} : vector<1x16xf32>, vector<16x16xf32>, vector<1x16xf32> -> vector<1x16xf32>
    %46 = arith.addf %43, %45 : vector<1x16xf32>
    %c0_40 = arith.constant 0 : index
    %c0_41 = arith.constant 0 : index
    %c0_42 = arith.constant 0 : index
    %47 = vector.load %arg4[%c0_40, %c0_41, %c0_42] : memref<1x1x16xf32, #tpu.memory_space<vmem>>, vector<1x1x16xf32>
    %48 = vector.shape_cast %47 : vector<1x1x16xf32> to vector<1x16xf32>
    %49 = arith.subf %46, %48 : vector<1x16xf32>
    %50 = arith.mulf %49, %49 : vector<1x16xf32>
    %c0_43 = arith.constant 0 : index
    %c0_44 = arith.constant 0 : index
    %c0_45 = arith.constant 0 : index
    %51 = vector.load %arg16[%c0_43, %c0_44, %c0_45] : memref<1x1x16xf32, #tpu.memory_space<vmem>>, vector<1x1x16xf32>
    %52 = vector.shape_cast %51 : vector<1x1x16xf32> to vector<1x16xf32>
    %53 = vector.shape_cast %50 : vector<1x16xf32> to vector<1x1x16xf32>
    tpu.vector_store %arg16[%c0_43, %c0_44, %c0_45], %53 {strides = array<i32>} : memref<1x1x16xf32, #tpu.memory_space<vmem>>, vector<1x1x16xf32>,
    return
  }
  func.func @transform_0(%arg0: i32) -> (i32, i32) {
    %c0_i32 = arith.constant 0 : i32
    %c0_i32_0 = arith.constant 0 : i32
    return %arg0, %c0_i32 : i32, i32
  }
  func.func @transform_1(%arg0: i32) -> (i32, i32, i32) {
    %c0_i32 = arith.constant 0 : i32
    %c0_i32_0 = arith.constant 0 : i32
    %c0_i32_1 = arith.constant 0 : i32
    return %arg0, %c0_i32, %c0_i32_0 : i32, i32, i32
  }
  func.func @transform_2(%arg0: i32) -> (i32, i32) {
    %c0_i32 = arith.constant 0 : i32
    %c0_i32_0 = arith.constant 0 : i32
    return %arg0, %c0_i32 : i32, i32
  }
  func.func @transform_3(%arg0: i32) -> (i32, i32, i32) {
    %c0_i32 = arith.constant 0 : i32
    %c0_i32_0 = arith.constant 0 : i32
    %c0_i32_1 = arith.constant 0 : i32
    return %arg0, %c0_i32, %c0_i32_0 : i32, i32, i32
  }
  func.func @transform_4(%arg0: i32) -> (i32, i32) {
    %c0_i32 = arith.constant 0 : i32
    %c0_i32_0 = arith.constant 0 : i32
    %c0_i32_1 = arith.constant 0 : i32
    return %c0_i32, %c0_i32_0 : i32, i32
  }
  func.func @transform_5(%arg0: i32) -> (i32, i32) {
    %c0_i32 = arith.constant 0 : i32
    %c0_i32_0 = arith.constant 0 : i32
    %c0_i32_1 = arith.constant 0 : i32
    return %c0_i32, %c0_i32_0 : i32, i32
  }
  func.func @transform_6(%arg0: i32) -> (i32, i32) {
    %c0_i32 = arith.constant 0 : i32
    %c0_i32_0 = arith.constant 0 : i32
    %c0_i32_1 = arith.constant 0 : i32
    return %c0_i32, %c0_i32_0 : i32, i32
  }
  func.func @transform_7(%arg0: i32) -> (i32, i32) {
    %c0_i32 = arith.constant 0 : i32
    %c0_i32_0 = arith.constant 0 : i32
    %c0_i32_1 = arith.constant 0 : i32
    return %c0_i32, %c0_i32_0 : i32, i32
  }
  func.func @transform_8(%arg0: i32) -> (i32, i32) {
    %c0_i32 = arith.constant 0 : i32
    %c0_i32_0 = arith.constant 0 : i32
    %c0_i32_1 = arith.constant 0 : i32
    return %c0_i32, %c0_i32_0 : i32, i32
  }
  func.func @transform_9(%arg0: i32) -> (i32, i32) {
    %c0_i32 = arith.constant 0 : i32
    %c0_i32_0 = arith.constant 0 : i32
    %c0_i32_1 = arith.constant 0 : i32
    return %c0_i32, %c0_i32_0 : i32, i32
  }
  func.func @transform_10(%arg0: i32) -> (i32, i32) {
    %c0_i32 = arith.constant 0 : i32
    %c0_i32_0 = arith.constant 0 : i32
    %c0_i32_1 = arith.constant 0 : i32
    return %c0_i32, %c0_i32_0 : i32, i32
  }
  func.func @transform_11(%arg0: i32) -> (i32, i32) {
    %c0_i32 = arith.constant 0 : i32
    %c0_i32_0 = arith.constant 0 : i32
    %c0_i32_1 = arith.constant 0 : i32
    return %c0_i32, %c0_i32_0 : i32, i32
  }
  func.func @transform_12(%arg0: i32) -> (i32, i32) {
    %c0_i32 = arith.constant 0 : i32
    %c0_i32_0 = arith.constant 0 : i32
    %c0_i32_1 = arith.constant 0 : i32
    return %c0_i32, %c0_i32_0 : i32, i32
  }
  func.func @transform_13(%arg0: i32) -> (i32, i32) {
    %c0_i32 = arith.constant 0 : i32
    %c0_i32_0 = arith.constant 0 : i32
    %c0_i32_1 = arith.constant 0 : i32
    return %c0_i32, %c0_i32_0 : i32, i32
  }
  func.func @transform_14(%arg0: i32) -> (i32, i32) {
    %c0_i32 = arith.constant 0 : i32
    %c0_i32_0 = arith.constant 0 : i32
    %c0_i32_1 = arith.constant 0 : i32
    return %c0_i32, %c0_i32_0 : i32, i32
  }
  func.func @transform_15(%arg0: i32) -> (i32, i32, i32) {
    %c0_i32 = arith.constant 0 : i32
    %c0_i32_0 = arith.constant 0 : i32
    %c0_i32_1 = arith.constant 0 : i32
    return %arg0, %c0_i32, %c0_i32_0 : i32, i32, i32
  }
}

</mosaic_0001>

<bundles_post_ra>
// kernel: tpu_custom_call.1
= control target key start
LH: loop header
LB: loop body
LE: loop exit
PB: predicated region body
PF: predicated region fallthrough
CT: control target
= control target key end

     0   :  { %s2563_s0 = inlined_call_operand.vmem [shape: bf16[256,32], index: 0, kind: input, shape index: {}]   ;;  %s2564_s1 = inlined_call_operand.vmem [shape: bf16[2,128,128], index: 1, kind: input, shape index: {}]   ;;  %s2565_s2 = inlined_call_operand.vmem [shape: f32[32,40], index: 2, kind: input, shape index: {}]   ;;  %s2566_s3 = inlined_call_operand.vmem [shape: f32[2,1,16], index: 3, kind: input, shape index: {}]   ;;  %s2567_s4 = inlined_call_operand.vmem [shape: bf16[32,32], index: 4, kind: input, shape index: {}]   ;;  %s2568_s5 = inlined_call_operand.vmem [shape: f32[1,32], index: 5, kind: input, shape index: {}]   ;;  %s2569_s6 = inlined_call_operand.vmem [shape: bf16[32,32], index: 6, kind: input, shape index: {}]   ;;  %s2570_s7 = inlined_call_operand.vmem [shape: f32[1,32], index: 7, kind: input, shape index: {}]   ;;  %s2571_s8 = inlined_call_operand.vmem [shape: f32[8,32], index: 8, kind: input, shape index: {}]   ;;  %s2572_s9 = inlined_call_operand.vmem [shape: f32[1,32], index: 9, kind: input, shape index: {}]   ;;  %s2573_s10 = inlined_call_operand.vmem [shape: f32[32,16], index: 10, kind: input, shape index: {}]   ;;  %s2574_s11 = inlined_call_operand.vmem [shape: f32[1,16], index: 11, kind: input, shape index: {}]   ;;  %s2575_s12 = inlined_call_operand.vmem [shape: f32[1,32], index: 12, kind: input, shape index: {}]   ;;  %s2576_s13 = inlined_call_operand.vmem [shape: f32[1,16], index: 13, kind: input, shape index: {}]   ;;  %s2577_s14 = inlined_call_operand.vmem [shape: f32[16,128], index: 14, kind: input, shape index: {}]   ;;  %s2578_s15 = inlined_call_operand.hbm [shape: f32[2,1,16], index: 15, kind: output, shape index: {}]  }
   0x1   :  { %2582 = sst [smem:[#allocation8_spill]] %s2563_s0 }
   0x2   :  { %2583 = sst [smem:[#allocation9_spill]] %s2564_s1 }
   0x3   :  { %20 = vsyncpa [#allocation3], 0 }
   0x4   :  { %22 = vsyncpa [#allocation3 + $0x1], 0  ;;  %s2330_s18 = smov 0   ;;  %s2332_s19 = smov 0  }
   0x5   :  { %s2334_s20 = smov 0   ;;  %s2336_s21 = smov 0  }
   0x6 LB: > { %2584 = sst [smem:[#allocation5_spill]] %s2239_s20  ;;  %s2351_s22 = sadd.s32 4294967295, %s2243_s21   ;;  %s2243_s21 = sphi %s2336_s21, %s2591_s21   ;;  %s2239_s20 = sphi %s2334_s20, %s2593_s20   ;;  %s2235_s19 = sphi %s2332_s19, %s2595_s19   ;;  %s2231_s18 = sphi %s2330_s18, %s2594_s18  }
   0x7   : > { %s1750_s23 = sadd.s32 4294967294, %s2243_s21   ;;  %s2355_s24 = sadd.s32 1, %s2243_s21  }
   0x8   : > { %2585 = sst [smem:[#allocation6_spill]] %s2355_s24  ;;  %s370_s25 = sadd.s32 1, %s2239_s20 }
   0x9   : > { %s367_s26 = ssub.s32 %s2243_s21, %s2355_s24  ;;  %p380_p0 = scmp.ne.s32.totalorder %s2239_s20, %s2235_s19 }
   0xa   : > { %p368_p1 = scmp.eq.s32.totalorder %s367_s26, 0  ;;  %p381_p2 = scmp.eq.s32.totalorder %s2351_s22, 1 }
   0xb   : > { %p386_p3 = scmp.ne.s32.totalorder %s2235_s19, %s2231_s18  ;;  %p387_p4 = scmp.eq.s32.totalorder %s1750_s23, 1 }
   0xc   : > { %s2366_s27 = scalar_select %p368_p1, %s2239_s20, %s370_s25  }
   0xd   : > { %p2368_p5 = por %p381_p2, %p380_p0  ;;  %p2372_p6 = por %p387_p4, %p386_p3 }
   0xe   : > { %2586 = sst [smem:[#allocation7_spill]] %s2366_s27  ;;  %p1753_p7 = scmp.ge.s32.totalorder %s2243_s21, 1 }
   0xf   : > { %p470_p8 = scmp.lt.s32.totalorder %s2243_s21, 3 }
  0x11   : > { %p471_p9 = pnand %p1753_p7, %p470_p8 }
  0x12   : > { %v2161_v0 = vld [vmem:[%s2567_s4] sm:$0xff] (!%p471_p9)   ;;  %s2382_s17 = sshll.u32 (!%p471_p9), %s2351_s22, 4  ;;  %v2162_v1 = vld [vmem:[%s2567_s4 + $0x8] sm:$0xff] (!%p471_p9)   ;;  %s2589_s0 = sld [smem:[#allocation8_spill]] (!%p471_p9)  ;;  %vm646_vm0 = vcmask (!%p471_p9), 261120   ;;  %vm1297_vm1 = vcmask (!%p471_p9), 64512  }
  0x13   : > { %474 = sbr.rel (%p471_p9) target bundleno = 1457 (0x5b1), region = 80  ;;  %p531_p10 = scmp.lt.s32.totalorder (!%p471_p9), %s2382_s17, 31  ;;  %1899 = vmatprep.subr.bf16.mxu0 (!%p471_p9), %v2161_v0  ;;  %v2179_v11 = vld [vmem:[%s2569_s6] sm:$0xff] (!%p471_p9)   ;;  %v2180_v12 = vld [vmem:[%s2569_s6 + $0x8] sm:$0xff] (!%p471_p9)   ;;  %vm1485_vm2 = vcmask (!%p471_p9), 130048   ;;  %vm2247_vm4 = vmmov (!%p471_p9), 0   ;;  %vm2114_vm5 = vmpackc.low (!%p471_p9), %vm646_vm0, %vm646_vm0 }
  0x14   : > { %1900 = vmatpush3.bf16.msra.mxu0 (!%p471_p9), %v2161_v0  ;;  %p536_p11 = scmp.lt.s32.totalorder (!%p471_p9), %s2351_s22, 1  ;;  %s2590_s1 = sld [smem:[#allocation9_spill]] (!%p471_p9)  ;;  %v1760_v13 = vld [vmem:[%s2568_s5] ss:$0 sm:$0xff] (!%p471_p9)  ;;  %vm2110_vm3 = vmpackc.low (!%p471_p9), %vm1485_vm2, %vm1485_vm2  ;;  %vm1647_vm6 = vcmask (!%p471_p9), 122880  }
  0x15   : > { %1901 = vmatprep.subr.bf16.mxu0 (!%p471_p9), %v2162_v1 }
  0x18   : > { %1902 = vmatpush3.bf16.msra.mxu0 (!%p471_p9), %v2162_v1 }
  0x19   : > { %1951 = vmatprep.subr.bf16.mxu0 (!%p471_p9), %v2179_v11 }
  0x1a   : > { %s532_s26 = scalar_select %p531_p10, %s2382_s17, 31 }
  0x1b   : > { %s2402_s20 = scalar_select %p536_p11, %s2351_s22, 1 }
  0x1c   : > { %s1755_s27 = sshll.u32 %s532_s26, 2  ;;  %s2249_s26 = smov [#allocation2]  }
  0x1d   : > { %s534_s30 = scalar_lea.vmem %s2589_s0, %s1755_s27  ;;  %s1813_s24 = sshll.u32 %s2402_s20, 6 }
  0x1e   : > { %v2163_v2 = vld [vmem:[%s534_s30] sm:$0xff]   ;;  %v2164_v3 = vld [vmem:[%s534_s30 + $0x8] sm:$0xff]   ;;  %v2165_v4 = vld [vmem:[%s534_s30 + $0x10] sm:$0xff]   ;;  %s2408_s23 = scalar_lea.vmem %s2590_s1, %s1813_s24  ;;  %s2245_s24 = smov 120  }
  0x1f   : > { %1903 = vmatprep.mubr.msk.bf16.mxu0 %vm646_vm0, %v2163_v2  ;;  %v2166_v5 = vld [vmem:[%s534_s30 + $0x18] sm:$0xff]   ;;  %v2167_v6 = vld [vmem:[%s534_s30 + $0x20] sm:$0xff]   ;;  %v2168_v7 = vld [vmem:[%s534_s30 + $0x28] sm:$0xff]  }
  0x20   : > { %1904 = vmatmul.mubr.msk.bf16.vlgmr.msra.gmra.mrb[0].mxu0 %vm646_vm0, %v2164_v3  ;;  %v2169_v8 = vld [vmem:[%s534_s30 + $0x30] sm:$0xff]   ;;  %v2170_v9 = vld [vmem:[%s534_s30 + $0x38] sm:$0xff]   ;;  %v2411_v10 = vld [vmem:[%s2408_s23] sm:$0xff]   ;;  %s2185_s30 = sshll.u32 %s2249_s26, 4  ;;  %s2186_s30 = int_to_ptr.vmem [resolvable:$false] %s2185_s30 }
  0x21   : > { %1907 = vmatprep.mubr.msk.bf16.mxu0 %vm646_vm0, %v2165_v4  ;;  %1935 = vmatprep.mubr.bf16.mxu1 %v2411_v10 }
  0x22   : > { %1952 = vmatpush3.bf16.msra.mxu0 %v2179_v11  ;;  %v2440_v11 = vld [vmem:[%s2408_s23 + $0x28] sm:$0xff]  }
  0x23   : > { %1953 = vmatprep.subr.bf16.mxu0 %v2180_v12 }
  0x26   : > { %1954 = vmatpush3.bf16.msra.mxu0 %v2180_v12  ;;  %v2443_v12 = vld [vmem:[%s2408_s23 + $0x30] sm:$0xff]  }
  0x28   : > { %1908 = vmatmul.mubr.msk.bf16.gmra.mrb[4].mxu0 %vm646_vm0, %v2166_v5 }
  0x29   : > { %1911 = vmatprep.mubr.msk.bf16.mxu0 %vm646_vm0, %v2167_v6  ;;  %v2424_v6 = vld [vmem:[%s2408_s23 + $0x8] sm:$0xff]  }
  0x30   : > { %1912 = vmatmul.mubr.msk.bf16.gmra.mrb[8].mxu0 %vm646_vm0, %v2168_v7  ;;  %v2427_v7 = vld [vmem:[%s2408_s23 + $0x10] sm:$0xff]  }
  0x31   : > { %1915 = vmatprep.mubr.msk.bf16.mxu0 %vm646_vm0, %v2169_v8  ;;  %v2432_v8 = vld [vmem:[%s2408_s23 + $0x18] sm:$0xff]  }
  0x38   : > { %1916 = vmatmul.mubr.msk.bf16.gmra.mrb[12].mxu0 %vm646_vm0, %v2170_v9  ;;  %v2435_v9 = vld [vmem:[%s2408_s23 + $0x20] sm:$0xff]  }
  0xf3   : > { %v1905_v14 = vpop.f32.mrb[0].mxu0 }
  0xf4   : > { %v714_v15 = vadd.f32 %v1905_v14, %v1760_v13  ;;  %v705_v16 = vpop.f32.mrb[1].mxu0 }
  0xf5   : > { %v706_v17 = vadd.f32 %v1760_v13, %v705_v16  ;;  %v1906_v18 = vpop.f32.mrb[2].mxu0 }
  0xf6   : > { %v717_v19 = vadd.f32 %v1906_v18, %v1760_v13  ;;  %v708_v20 = vpop.f32.mrb[3].mxu0  ;;  %v770_v22 = vmax.f32 %v714_v15, 0.0 }
  0xf7   : > { %v709_v21 = vadd.f32 %v1760_v13, %v708_v20  ;;  %v768_v24 = vmax.f32 %v706_v17, 0.0 }
  0xf8   : > { %v771_v23 = vmax.f32 %v717_v19, 0.0 }
  0xf9   : > { %v769_v25 = vmax.f32 %v709_v21, 0.0 }
  0xfa   : > { %v785_v26 = vpack.c.bf16 %v771_v23, %v770_v22 }
  0xfb   : > { %v1909_v27 = vpop.f32.mrb[4].mxu0  ;;  %v784_v28 = vpack.c.bf16 %v769_v25, %v768_v24 }
  0xfc   : > { %v730_v29 = vadd.f32 %v1909_v27, %v1760_v13  ;;  %v721_v30 = vpop.f32.mrb[5].mxu0 }
  0xfd   : > { %v722_v31 = vadd.f32 %v1760_v13, %v721_v30  ;;  %v1910_v32 = vpop.f32.mrb[6].mxu0  ;;  %1919 = vmatprep.subr.bf16.mxu1 %v784_v28 }
  0xfe   : > { %v733_v33 = vadd.f32 %v1910_v32, %v1760_v13  ;;  %v724_v34 = vpop.f32.mrb[7].mxu0  ;;  %1920 = vmatpush3.bf16.msra.mxu1 %v784_v28  ;;  %v774_v36 = vmax.f32 %v730_v29, 0.0 }
  0xff   : > { %v725_v35 = vadd.f32 %v1760_v13, %v724_v34  ;;  %1921 = vmatprep.subr.bf16.mxu1 %v785_v26  ;;  %v772_v38 = vmax.f32 %v722_v31, 0.0 }
 0x100   : > { %v775_v37 = vmax.f32 %v733_v33, 0.0 }
 0x101   : > { %v773_v39 = vmax.f32 %v725_v35, 0.0 }
 0x102   : > { %v787_v40 = vpack.c.bf16 %v775_v37, %v774_v36  ;;  %1922 = vmatpush3.bf16.msra.mxu1 %v785_v26  ;;  %v1289_v37 = vld [vmem:[%s2571_s8] sm:$0xff] }
 0x103   : > { %v786_v41 = vpack.c.bf16 %v773_v39, %v772_v38  ;;  %v1913_v42 = vpop.f32.mrb[8].mxu0  ;;  %2038 = vmatprep.subr.mxu0 %v1289_v37 }
 0x104   : > { %v746_v43 = vadd.f32 %v1913_v42, %v1760_v13  ;;  %v737_v44 = vpop.f32.mrb[9].mxu0 }
 0x105   : > { %v738_v45 = vadd.f32 %v1760_v13, %v737_v44  ;;  %v1914_v46 = vpop.f32.mrb[10].mxu0  ;;  %1923 = vmatprep.subr.bf16.mxu1 %v786_v41 }
 0x106   : > { %v749_v47 = vadd.f32 %v1914_v46, %v1760_v13  ;;  %v740_v48 = vpop.f32.mrb[11].mxu0  ;;  %1924 = vmatpush3.bf16.msra.mxu1 %v786_v41  ;;  %v778_v50 = vmax.f32 %v746_v43, 0.0 }
 0x107   : > { %v741_v49 = vadd.f32 %v1760_v13, %v740_v48  ;;  %1925 = vmatprep.subr.bf16.mxu1 %v787_v40  ;;  %v776_v52 = vmax.f32 %v738_v45, 0.0 }
 0x108   : > { %v779_v51 = vmax.f32 %v749_v47, 0.0 }
 0x109   : > { %v777_v53 = vmax.f32 %v741_v49, 0.0 }
 0x10a   : > { %v789_v54 = vpack.c.bf16 %v779_v51, %v778_v50  ;;  %1926 = vmatpush3.bf16.msra.mxu1 %v787_v40  ;;  %v1787_v40 = vld [vmem:[%s2570_s7] ss:$0 sm:$0xff] }
 0x10b   : > { %v788_v55 = vpack.c.bf16 %v777_v53, %v776_v52  ;;  %v1917_v56 = vpop.f32.mrb[12].mxu0 }
 0x10c   : > { %v762_v57 = vadd.f32 %v1917_v56, %v1760_v13  ;;  %v753_v58 = vpop.f32.mrb[13].mxu0 }
 0x10d   : > { %v754_v59 = vadd.f32 %v1760_v13, %v753_v58  ;;  %v1918_v60 = vpop.f32.mrb[14].mxu0  ;;  %1927 = vmatprep.subr.bf16.mxu1 %v788_v55 }
 0x10e   : > { %v765_v61 = vadd.f32 %v1918_v60, %v1760_v13  ;;  %v756_v62 = vpop.f32.mrb[15].mxu0  ;;  %1928 = vmatpush3.bf16.msra.mxu1 %v788_v55  ;;  %v782_v0 = vmax.f32 %v762_v57, 0.0 }
 0x10f   : > { %v757_v63 = vadd.f32 %v1760_v13, %v756_v62  ;;  %1929 = vmatprep.subr.bf16.mxu1 %v789_v54  ;;  %v780_v2 = vmax.f32 %v754_v59, 0.0  ;;  %v2448_v13 = vld [vmem:[%s2408_s23 + $0x38] sm:$0xff]   ;;  %s1758_s23 = sshll.u32 %s2351_s22, 1  ;;  %s2521_s22 = scalar_lea.hbm %s2578_s15, %s2382_s17 }
 0x110   : > { %v783_v1 = vmax.f32 %v765_v61, 0.0  ;;  %p542_p12 = scmp.lt.s32.totalorder %s1758_s23, 3 }
 0x111   : > { %v781_v3 = vmax.f32 %v757_v63, 0.0 }
 0x112   : > { %v791_v4 = vpack.c.bf16 %v783_v1, %v782_v0  ;;  %1930 = vmatpush3.bf16.msra.mxu1 %v789_v54  ;;  %s2597_s23 = smov (!%p542_p12, %s1758_s23), 3 }
 0x113   : > { %v790_v5 = vpack.c.bf16 %v781_v3, %v780_v2  ;;  %s1759_s25 = sshll.u32 %s2597_s23, 3 }
 0x114   : > { %s545_s27 = scalar_lea.vmem %s2565_s2, %s1759_s25  ;;  %s528_s25 = sand.u32 1, %s2235_s19  }
 0x115   : > { %1931 = vmatprep.subr.bf16.mxu1 %v790_v5  ;;  %v1287_v38 = vld [vmem:[%s545_s27] sm:$0xff]  ;;  %v1288_v39 = vld [vmem:[%s545_s27 + $0x8] sm:$0xff]  ;;  %s549_s27 = scalar_lea.vmem %s2566_s3, %s2402_s20  ;;  %s1650_s20 = scalar_lea.sflag [#allocation3], %s528_s25 }
 0x116   : > { %1932 = vmatpush3.bf16.msra.mxu1 %v790_v5  ;;  %1381 = vrot.lane.b32.xlu0 %v1287_v38, %s2245_s24 }
 0x117   : > { %1933 = vmatprep.subr.bf16.mxu1 %v791_v4 }
 0x11a   : > { %1934 = vmatpush3.bf16.msra.mxu1 %v791_v4  ;;  %1383 = vrot.lane.b32.xlu0 %v1288_v39, %s2245_s24  ;;  %s529_s24 = scalar_lea.vmem [#allocation2], %s528_s25 }
 0x11b   : > { %s1662_s0 = sshll.u32 %s529_s24, 4  ;;  %s2523_s0 = int_to_ptr.vmem [resolvable:$true] %s1662_s0 }
 0x11c   : > { %s2181_s23 = scalar_lea.vmem %s2523_s0, 16  ;;  %p2188_p2 = scmp.lt.s32.totalorder %s2523_s0, %s2186_s30 }
 0x11d   : > { %1936 = vmatmul.mubr.bf16.vlgmr.msra.gmra.mrb[0].mxu1 %v2424_v6  ;;  %p2182_p13 = scmp.ne.s32.totalorder %s2523_s0, %s2181_s23 }
 0x11e   : > { %1939 = vmatprep.mubr.bf16.mxu1 %v2427_v7 }
 0x11f   : > { %p2183_p0 = pnand %p2182_p13, %p2368_p5 }
 0x121   : > { %p2184_p1 = pneg %p2183_p0 }
 0x125   : > { %1940 = vmatmul.mubr.bf16.gmra.mrb[4].mxu1 %v2432_v8 }
 0x126   : > { %1943 = vmatprep.mubr.bf16.mxu1 %v2435_v9 }
 0x12d   : > { %1944 = vmatmul.mubr.bf16.gmra.mrb[8].mxu1 %v2440_v11 }
 0x12e   : > { %1947 = vmatprep.mubr.bf16.mxu1 %v2443_v12 }
 0x135   : > { %1948 = vmatmul.mubr.bf16.gmra.mrb[12].mxu1 %v2448_v13 }
 0x136   : > { %1987 = vmatprep.mubr.bf16.mxu1 %v2411_v10 }
 0x1f0   : > { %v1937_v14 = vpop.f32.mrb[0].mxu1 }
 0x1f1   : > { %v874_v15 = vpop.f32.mrb[1].mxu1 }
 0x1f2   : > { %v1938_v16 = vpop.f32.mrb[2].mxu1 }
 0x1f3   : > { %v938_v17 = vpack.c.bf16 %v1938_v16, %v1937_v14  ;;  %v877_v18 = vpop.f32.mrb[3].mxu1 }
 0x1f4   : > { %v937_v19 = vpack.c.bf16 %v877_v18, %v874_v15 }
 0x1f6   : > { %1955 = vmatprep.mubr.msk.bf16.mxu0 %vm646_vm0, %v937_v19 }
 0x1f7   : > { %1956 = vmatmul.mubr.msk.bf16.vlgmr.msra.gmra.mrb[16].mxu0 %vm646_vm0, %v938_v17 }
 0x1f8   : > { %v1941_v20 = vpop.f32.mrb[4].mxu1  ;;  %2039 = vmatpush3.msra.mxu0 %v1289_v37 }
 0x1f9   : > { %v890_v21 = vpop.f32.mrb[5].mxu1 }
 0x1fa   : > { %v1942_v22 = vpop.f32.mrb[6].mxu1 }
 0x1fb   : > { %v940_v23 = vpack.c.bf16 %v1942_v22, %v1941_v20  ;;  %v893_v24 = vpop.f32.mrb[7].mxu1 }
 0x1fc   : > { %v939_v25 = vpack.c.bf16 %v893_v24, %v890_v21 }
 0x1fe   : > { %1959 = vmatprep.mubr.msk.bf16.mxu0 %vm646_vm0, %v939_v25 }
 0x1ff   : > { %1960 = vmatmul.mubr.msk.bf16.gmra.mrb[20].mxu0 %vm646_vm0, %v940_v23 }
 0x200   : > { %v1945_v10 = vpop.f32.mrb[8].mxu1 }
 0x201   : > { %v906_v26 = vpop.f32.mrb[9].mxu1 }
 0x202   : > { %v1946_v27 = vpop.f32.mrb[10].mxu1 }
 0x203   : > { %v942_v28 = vpack.c.bf16 %v1946_v27, %v1945_v10  ;;  %v909_v29 = vpop.f32.mrb[11].mxu1 }
 0x204   : > { %v941_v30 = vpack.c.bf16 %v909_v29, %v906_v26 }
 0x206   : > { %1963 = vmatprep.mubr.msk.bf16.mxu0 %vm646_vm0, %v941_v30 }
 0x207   : > { %1964 = vmatmul.mubr.msk.bf16.gmra.mrb[24].mxu0 %vm646_vm0, %v942_v28 }
 0x208   : > { %v1949_v31 = vpop.f32.mrb[12].mxu1 }
 0x209   : > { %v922_v32 = vpop.f32.mrb[13].mxu1 }
 0x20a   : > { %v1950_v33 = vpop.f32.mrb[14].mxu1 }
 0x20b   : > { %v944_v34 = vpack.c.bf16 %v1950_v33, %v1949_v31  ;;  %v925_v35 = vpop.f32.mrb[15].mxu1 }
 0x20c   : > { %v943_v36 = vpack.c.bf16 %v925_v35, %v922_v32 }
 0x20e   : > { %1967 = vmatprep.mubr.msk.bf16.mxu0 %vm646_vm0, %v943_v36 }
 0x20f   : > { %1968 = vmatmul.mubr.msk.bf16.gmra.mrb[28].mxu0 %vm646_vm0, %v944_v34 }
 0x210   : > { %2040 = vmatprep.mubr.msk.f32.mxu0 %vm1297_vm1, %v1287_v38 }
 0x217   : > { %2041 = vmatmul.mubr.msk.f32.vlgmr.msra.gmra.mrb[32].mxu0 %vm1297_vm1, %v1288_v39 }
 0x2ca   : > { %v1957_v41 = vpop.f32.mrb[16].mxu0 }
 0x2cb   : > { %v1035_v42 = vadd.f32 %v1957_v41, %v1787_v40  ;;  %v1026_v43 = vpop.f32.mrb[17].mxu0 }
 0x2cc   : > { %v1027_v44 = vadd.f32 %v1787_v40, %v1026_v43  ;;  %v1958_v45 = vpop.f32.mrb[18].mxu0  ;;  %v1392_v43 = vld [vmem:[%s2573_s10 + $0x18] sm:$0xff] }
 0x2cd   : > { %v1038_v46 = vadd.f32 %v1958_v45, %v1787_v40  ;;  %v1029_v47 = vpop.f32.mrb[19].mxu0  ;;  %v1091_v49 = vmax.f32 %v1035_v42, 0.0 }
 0x2ce   : > { %v1030_v48 = vadd.f32 %v1787_v40, %v1029_v47  ;;  %v1089_v51 = vmax.f32 %v1027_v44, 0.0 }
 0x2cf   : > { %v1092_v50 = vmax.f32 %v1038_v46, 0.0 }
 0x2d0   : > { %v1090_v52 = vmax.f32 %v1030_v48, 0.0 }
 0x2d1   : > { %v1106_v53 = vpack.c.bf16 %v1092_v50, %v1091_v49  ;;  %v1210_v50 = vld [vmem:[%s2577_s14] sm:$0xff] }
 0x2d2   : > { %v1105_v54 = vpack.c.bf16 %v1090_v52, %v1089_v51  ;;  %v1961_v55 = vpop.f32.mrb[20].mxu0  ;;  %v2246_v51 = vmov 0.0|0.0  }
 0x2d3   : > { %v1051_v56 = vadd.f32 %v1961_v55, %v1787_v40  ;;  %v1042_v57 = vpop.f32.mrb[21].mxu0 }
 0x2d4   : > { %v1043_v58 = vadd.f32 %v1787_v40, %v1042_v57  ;;  %v1962_v59 = vpop.f32.mrb[22].mxu0  ;;  %1971 = vmatprep.subr.bf16.mxu1 %v1105_v54 }
 0x2d5   : > { %v1054_v60 = vadd.f32 %v1962_v59, %v1787_v40  ;;  %v1045_v61 = vpop.f32.mrb[23].mxu0  ;;  %1972 = vmatpush3.bf16.msra.mxu1 %v1105_v54  ;;  %v1095_v63 = vmax.f32 %v1051_v56, 0.0 }
 0x2d6   : > { %v1046_v62 = vadd.f32 %v1787_v40, %v1045_v61  ;;  %1973 = vmatprep.subr.bf16.mxu1 %v1106_v53  ;;  %v1093_v1 = vmax.f32 %v1043_v58, 0.0 }
 0x2d7   : > { %v1096_v0 = vmax.f32 %v1054_v60, 0.0 }
 0x2d8   : > { %v1094_v2 = vmax.f32 %v1046_v62, 0.0 }
 0x2d9   : > { %v1108_v3 = vpack.c.bf16 %v1096_v0, %v1095_v63  ;;  %1974 = vmatpush3.bf16.msra.mxu1 %v1106_v53 }
 0x2da   : > { %v1107_v4 = vpack.c.bf16 %v1094_v2, %v1093_v1  ;;  %v1965_v5 = vpop.f32.mrb[24].mxu0 }
 0x2db   : > { %v1067_v14 = vadd.f32 %v1965_v5, %v1787_v40  ;;  %v1058_v15 = vpop.f32.mrb[25].mxu0 }
 0x2dc   : > { %v1059_v16 = vadd.f32 %v1787_v40, %v1058_v15  ;;  %v1966_v17 = vpop.f32.mrb[26].mxu0  ;;  %1975 = vmatprep.subr.bf16.mxu1 %v1107_v4 }
 0x2dd   : > { %v1070_v18 = vadd.f32 %v1966_v17, %v1787_v40  ;;  %v1061_v19 = vpop.f32.mrb[27].mxu0  ;;  %1976 = vmatpush3.bf16.msra.mxu1 %v1107_v4  ;;  %v1099_v21 = vmax.f32 %v1067_v14, 0.0 }
 0x2de   : > { %v1062_v20 = vadd.f32 %v1787_v40, %v1061_v19  ;;  %1977 = vmatprep.subr.bf16.mxu1 %v1108_v3  ;;  %v1097_v23 = vmax.f32 %v1059_v16, 0.0 }
 0x2df   : > { %v1100_v22 = vmax.f32 %v1070_v18, 0.0 }
 0x2e0   : > { %v1098_v24 = vmax.f32 %v1062_v20, 0.0  ;;  %v1211_v20 = vld [vmem:[%s2577_s14 + $0x8] sm:$0xff] }
 0x2e1   : > { %v1110_v25 = vpack.c.bf16 %v1100_v22, %v1099_v21  ;;  %1978 = vmatpush3.bf16.msra.mxu1 %v1108_v3  ;;  %v1801_v21 = vld [vmem:[%s2574_s11] ss:$0 sm:$0xff] }
 0x2e2   : > { %v1109_v10 = vpack.c.bf16 %v1098_v24, %v1097_v23  ;;  %v1969_v26 = vpop.f32.mrb[28].mxu0 }
 0x2e3   : > { %v1083_v27 = vadd.f32 %v1969_v26, %v1787_v40  ;;  %v1074_v28 = vpop.f32.mrb[29].mxu0 }
 0x2e4   : > { %v1075_v29 = vadd.f32 %v1787_v40, %v1074_v28  ;;  %v1970_v30 = vpop.f32.mrb[30].mxu0  ;;  %1979 = vmatprep.subr.bf16.mxu1 %v1109_v10  ;;  %v2248_v28 = vmov 0.0  }
 0x2e5   : > { %v1086_v31 = vadd.f32 %v1970_v30, %v1787_v40  ;;  %v1077_v32 = vpop.f32.mrb[31].mxu0  ;;  %1980 = vmatpush3.bf16.msra.mxu1 %v1109_v10  ;;  %v1103_v34 = vmax.f32 %v1083_v27, 0.0 }
 0x2e6   : > { %v1078_v33 = vadd.f32 %v1787_v40, %v1077_v32  ;;  %1981 = vmatprep.subr.bf16.mxu1 %v1110_v25  ;;  %v1101_v36 = vmax.f32 %v1075_v29, 0.0  ;;  %v1389_v40 = vld [vmem:[%s2573_s10] sm:$0xff] }
 0x2e7   : > { %v1104_v35 = vmax.f32 %v1086_v31, 0.0  ;;  %v1484_v29 = vld [vmem:[%s2576_s13] sm:$0x1] }
 0x2e8   : > { %v1102_v37 = vmax.f32 %v1078_v33, 0.0  ;;  %v1483_v33 = vld [vmem:[%s2575_s12] sm:$0x1] }
 0x2e9   : > { %v1112_v38 = vpack.c.bf16 %v1104_v35, %v1103_v34  ;;  %1982 = vmatpush3.bf16.msra.mxu1 %v1110_v25  ;;  %v1644_v34 = vld [vmem:[%s549_s27] sm:$0x1]  ;;  %s2187_s27 = scalar_lea.vmem %s2186_s30, 32 }
 0x2ea   : > { %v1111_v39 = vpack.c.bf16 %v1102_v37, %v1101_v36  ;;  %p2189_p3 = scmp.lt.s32.totalorder %s2187_s27, %s2181_s23 }
 0x2ec   : > { %1983 = vmatprep.subr.bf16.mxu1 %v1111_v39  ;;  %p2190_p4 = por %p2189_p3, %p2188_p2 }
 0x2ed   : > { %1984 = vmatpush3.bf16.msra.mxu1 %v1111_v39 }
 0x2ee   : > { %1985 = vmatprep.subr.bf16.mxu1 %v1112_v38  ;;  %p2191_p7 = pnand %p2190_p4, %p2184_p1 }
 0x2f1   : > { %1986 = vmatpush3.bf16.msra.mxu1 %v1112_v38 }
 0x2f4   : > { %1988 = vmatmul.mubr.bf16.vlgmr.msra.gmra.mrb[16].mxu1 %v2424_v6  ;;  %v1390_v6 = vld [vmem:[%s2573_s10 + $0x8] sm:$0xff] }
 0x2f5   : > { %1991 = vmatprep.mubr.bf16.mxu1 %v2427_v7  ;;  %v2100_v41 = vpack.c.bf16 %v1390_v6, %v1389_v40  ;;  %v2042_v7 = vpop.f32.mrb[32].mxu0 }
 0x2f7   : > { %2101 = vmatprep.subr.bf16.mxu0 %v2100_v41 }
 0x2f8   : > { %2103 = vmatpush3.bf16.msra.mxu0 %v2100_v41 }
 0x2fc   : > { %1992 = vmatmul.mubr.bf16.gmra.mrb[20].mxu1 %v2432_v8  ;;  %v1798_v8 = vld [vmem:[%s2572_s9] ss:$0 sm:$0xff] }
 0x2fd   : > { %1995 = vmatprep.mubr.bf16.mxu1 %v2435_v9  ;;  %v1376_v9 = vadd.f32 %v2042_v7, %v1798_v8 }
 0x2ff   : > { %v1380_v44 = vmax.f32 %v1376_v9, 0.0 }
 0x304   : > { %1996 = vmatmul.mubr.bf16.gmra.mrb[24].mxu1 %v2440_v11  ;;  %v1370_v11 = vpop.f32.mrb[33].mxu0 }
 0x305   : > { %1999 = vmatprep.mubr.bf16.mxu1 %v2443_v12  ;;  %v1382_v12 = vpop.permute.xlu0 %1381  ;;  %v1371_v42 = vadd.f32 %v1798_v8, %v1370_v11 }
 0x307   : > { %v1379_v46 = vmax.f32 %v1371_v42, 0.0 }
 0x309   : > { %v1387_v47 = vmul.f32 %v1382_v12, %v1379_v46  ;;  %v1384_v48 = vpop.permute.xlu0 %1383 }
 0x30a   : > { %v1388_v49 = vmul.f32 %v1384_v48, %v1380_v44 }
 0x30b   : > { %2051 = vmatprep.mubr.msk.f32.mxu0 %vm646_vm0, %v1387_v47 }
 0x30c   : > { %2000 = vmatmul.mubr.bf16.gmra.mrb[28].mxu1 %v2448_v13  ;;  %v1391_v13 = vld [vmem:[%s2573_s10 + $0x10] sm:$0xff] }
 0x30d   : > { %v2104_v45 = vpack.c.bf16 %v1392_v43, %v1391_v13  ;;  %2035 = vmatprep.mubr.f32.mxu1 %v1210_v50 }
 0x30f   : > { %2105 = vmatprep.subr.bf16.mxu0 %v2104_v45 }
 0x310   : > { %2107 = vmatpush3.bf16.msra.mxu0 %v2104_v45 }
 0x311   : > { %2108 = vmatprep.subr.bf16.mxu0 %v2246_v51 }
 0x313   : > { %2052 = vmatmul.mubr.msk.f32.vlgmr.msra.gmra.mrb[34].mxu0 %vm646_vm0, %v1388_v49 }
 0x314   : > { %2058 = vmatprep.mubr.msk.f32.mxu0 %vm2247_vm4, %v2248_v28 }
 0x3c7   : > { %v1989_v52 = vpop.f32.mrb[16].mxu1 }
 0x3c8   : > { %v1147_v53 = vpop.f32.mrb[17].mxu1 }
 0x3c9   : > { %v1990_v54 = vpop.f32.mrb[18].mxu1 }
 0x3ca   : > { %v2072_v55 = vpack.c.bf16 %v1990_v54, %v1989_v52  ;;  %v1150_v56 = vpop.f32.mrb[19].mxu1 }
 0x3cb   : > { %v2068_v57 = vpack.c.bf16 %v1150_v56, %v1147_v53 }
 0x3cd   : > { %2069 = vmatprep.subr.bf16.mxu1 %v2068_v57 }
 0x3ce   : > { %2071 = vmatpush3.bf16.msra.mxu1 %v2068_v57 }
 0x3cf   : > { %v1993_v58 = vpop.f32.mrb[20].mxu1  ;;  %2073 = vmatprep.subr.bf16.mxu1 %v2072_v55 }
 0x3d0   : > { %v1163_v59 = vpop.f32.mrb[21].mxu1 }
 0x3d1   : > { %v1994_v60 = vpop.f32.mrb[22].mxu1 }
 0x3d2   : > { %v2080_v61 = vpack.c.bf16 %v1994_v60, %v1993_v58  ;;  %v1166_v62 = vpop.f32.mrb[23].mxu1  ;;  %2075 = vmatpush3.bf16.msra.mxu1 %v2072_v55 }
 0x3d3   : > { %v2076_v63 = vpack.c.bf16 %v1166_v62, %v1163_v59 }
 0x3d5   : > { %2077 = vmatprep.subr.bf16.mxu1 %v2076_v63 }
 0x3d6   : > { %2079 = vmatpush3.bf16.msra.mxu1 %v2076_v63 }
 0x3d7   : > { %v1997_v0 = vpop.f32.mrb[24].mxu1  ;;  %2081 = vmatprep.subr.bf16.mxu1 %v2080_v61 }
 0x3d8   : > { %v1179_v1 = vpop.f32.mrb[25].mxu1 }
 0x3d9   : > { %v1998_v2 = vpop.f32.mrb[26].mxu1 }
 0x3da   : > { %v2088_v3 = vpack.c.bf16 %v1998_v2, %v1997_v0  ;;  %v1182_v4 = vpop.f32.mrb[27].mxu1  ;;  %2083 = vmatpush3.bf16.msra.mxu1 %v2080_v61 }
 0x3db   : > { %v2084_v5 = vpack.c.bf16 %v1182_v4, %v1179_v1 }
 0x3dd   : > { %2085 = vmatprep.subr.bf16.mxu1 %v2084_v5 }
 0x3de   : > { %2087 = vmatpush3.bf16.msra.mxu1 %v2084_v5 }
 0x3df   : > { %v2001_v14 = vpop.f32.mrb[28].mxu1  ;;  %2089 = vmatprep.subr.bf16.mxu1 %v2088_v3 }
 0x3e0   : > { %v1195_v15 = vpop.f32.mrb[29].mxu1 }
 0x3e1   : > { %v2002_v16 = vpop.f32.mrb[30].mxu1 }
 0x3e2   : > { %v2096_v17 = vpack.c.bf16 %v2002_v16, %v2001_v14  ;;  %v1198_v18 = vpop.f32.mrb[31].mxu1  ;;  %2091 = vmatpush3.bf16.msra.mxu1 %v2088_v3 }
 0x3e3   : > { %v2092_v19 = vpack.c.bf16 %v1198_v18, %v1195_v15 }
 0x3e5   : > { %2093 = vmatprep.subr.bf16.mxu1 %v2092_v19 }
 0x3e6   : > { %2095 = vmatpush3.bf16.msra.mxu1 %v2092_v19  ;;  %v2053_v22 = vpop.f32.mrb[34].mxu0 }
 0x3e7   : > { %2097 = vmatprep.subr.bf16.mxu1 %v2096_v17  ;;  %v1478_v23 = vadd.f32 %v2053_v22, %v1801_v21  ;;  %v1472_v24 = vpop.f32.mrb[35].mxu0 }
 0x3e8   : > { %v1473_v25 = vadd.f32 %v1801_v21, %v1472_v24 }
 0x3e9   : > { %v1482_v10 = vmax.f32 %v1478_v23, 0.0 }
 0x3ea   : > { %2099 = vmatpush3.bf16.msra.mxu1 %v2096_v17  ;;  %v1481_v26 = vmax.f32 %v1473_v25, 0.0 }
 0x3ec   : > { %v2109_v27 = vpack.c.bf16 %v1482_v10, %v1481_v26 }
 0x3ed   : > { %2036 = vmatmul.mubr.f32.vlgmr.msra.gmra.mrb[32].mxu1 %v1211_v20 }
 0x3ee   : > { %2111 = vmatpush3.bf16.xpose.msk.msra.mxu0 %vm2110_vm3, %v2109_v27 }
 0x3ef   : > { %2112 = vmatprep.subr.bf16.mxu0 %v2246_v51 }
 0x3f5   : > { %2059 = vmatmul.mubr.msk.f32.vlgmr.msra.gmra.mrb[36].mxu0 %vm1485_vm2, %v1484_v29 }
 0x3f6   : > { %2065 = vmatprep.mubr.msk.f32.mxu0 %vm2247_vm4, %v2248_v28 }
 0x4c0   : > { %v2037_v30 = vpop.f32.mrb[32].mxu1 }
 0x4c1   : > { %v1278_v31 = vpop.f32.mrb[33].mxu1 }
 0x4c2   : > { %v2113_v32 = vpack.c.bf16 %v2037_v30, %v1278_v31 }
 0x4c4   : > { %2115 = vmatpush3.bf16.xpose.msk.msra.mxu0 %vm2114_vm5, %v2113_v32 }
 0x4cb   : > { %2066 = vmatmul.mubr.msk.f32.vlgmr.msra.gmra.mrb[36].mxu0 %vm646_vm0, %v1483_v33 }
 0x59e   : > { %v1640_v35 = vpop.f32.mrb[36].mxu0 }
 0x59f   : > { %v1645_v36 = vsub.f32 %v1640_v35, %v1644_v34  ;;  %v2067_v37 = vpop.f32.mrb[37].mxu0 }
 0x5a1   : > { %v1646_v38 = vmul.f32 %v1645_v36, %v1645_v36 }
 0x5a3   : > { %1648 = vst.msk [vmem:[%s529_s24] sm:$0x1] %vm1647_vm6, %v1646_v38 }
 0x5a4   : > { %2194 = shalt.err (!%p2191_p7)
}
 0x5a5   : > { %s2195_s1 = scalar_lea.hbm %s2521_s22, 16  ;;  %s2199_s24 = scalar_lea.hbm %s2578_s15, 32 }
 0x5a6   : > { %p2196_p8 = scmp.ne.s32.totalorder %s2521_s22, %s2195_s1  ;;  %p2200_p11 = scmp.lt.u32.totalorder %s2521_s22, %s2578_s15 }
 0x5a7   : > { %p2201_p12 = scmp.lt.u32.totalorder %s2199_s24, %s2195_s1  ;;  %p2203_p0 = scmp.lt.u32.totalorder %s2195_s1, %s2521_s22 }
 0x5a8   : > { %p2197_p9 = pnand %p2196_p8, %p2368_p5 }
 0x5a9   : > { %p2202_p13 = por %p2201_p12, %p2200_p11 }
 0x5aa   : > { %p2198_p10 = pneg %p2197_p9 }
 0x5ab   : > { %p2204_p1 = por %p2203_p0, %p2202_p13 }
 0x5ad   : > { %p2205_p2 = pnand %p2204_p1, %p2198_p10 }
 0x5af   : > { %2208 = shalt.err (!%p2205_p2)
}
 0x5b0   : > { %2118 = dma.vmem_to_hbm [thread:$0]  (%p2368_p5), %s2523_s0, 16, %s2521_s22, %s1650_s20  }
 0x5b1 PF: > { %p2124_p3 = scmp.ge.s32.totalorder %s2243_s21, 2  ;;  %s1674_s23 = sand.u32 1, %s2231_s18  }
 0x5b2   : > { %s1675_s30 = scalar_lea.sflag [#allocation3], %s1674_s23 }
 0x5b3   : > { %p2121_p4 = pnand %p2124_p3, %p2372_p6 }
 0x5b5   : > { %2226 = dma.done.wait (!%p2121_p4), %s1675_s30, 16  }
 0x5b6   : > { %2228 = vsyncadd (!%p2121_p4), %s1675_s30, 4294967280  ;;  %s2591_s21 = sld [smem:[#allocation6_spill]]  ;;  %s2592_s27 = sld [smem:[#allocation5_spill]] }
 0x5b7   : > { %s2593_s20 = sld [smem:[#allocation7_spill]]  ;;  %s2594_s18 = smov %s2235_s19 }
 0x5bc   : > { %p25_p7 = scmp.ge.s32.totalorder %s2591_s21, 4   ;;  %s2595_s19 = smov %s2592_s27 }
 0x5be   :  { %27 = sbr.rel (!%p25_p7) target bundleno = 6 (0x6), region = 124 }
 0x5c5   :  { %1679 = vsyncpa [#allocation3], 1 }
 0x5c6   :  { %1681 = vsyncpa [#allocation3 + $0x1], 1 }

</bundles_post_ra>
